<compile_context>
chip_gen: v6e
topology: v6e:2x2x1
jax: 0.10.0
libtpu: 0.0.40
codegen_flags: <defaults>
</compile_context>

<pallas_src>
import functools

import jax
import jax.numpy as jnp
from jax.experimental import pallas as pl
from jax.experimental.pallas import tpu as pltpu

_VMEM_HEADROOM = 2 << 20          # leave a little scoped-VMEM slack
_FALLBACK_TILE_BYTES = 2 << 20    # per-buffer cap for the streaming fallback


def _vmem_capacity_bytes():
    try:
        return int(pltpu.get_tpu_info().vmem_capacity_bytes)
    except Exception:  # emulator / unknown chip: assume the smallest (v7x)
        return 64 << 20


# ---------------------------------------------------------------------------
# Fused kernel: mean -> fc1 -> ReLU -> fc2 -> sigmoid -> rescale, one batch
# per grid step, the whole (C, HW) slab resident in VMEM.
# ---------------------------------------------------------------------------
def _se_fused_kernel(x_ref, w1t_ref, w2_ref, o_ref, *, inv_hw):
    x = x_ref[0]                                              # (C, HW)
    mean = jnp.sum(x, axis=-1, keepdims=True) * inv_hw        # (C, 1) channel means
    # fc1: h[j] = sum_i W1[j, i] * mean[i]   (w1t = W1.T, shape (C, C//r))
    h = jnp.sum(w1t_ref[...] * mean, axis=0, keepdims=True)   # (1, C//r)
    h = jnp.maximum(h, 0.0)                                    # ReLU
    # fc2: z[k] = sum_j W2[k, j] * h[j]      (w2 untransposed, shape (C, C//r))
    z = jnp.sum(w2_ref[...] * h, axis=1, keepdims=True)       # (C, 1)
    s = 1.0 / (1.0 + jnp.exp(-z))                              # sigmoid (EUP exp)
    o_ref[0] = x * s                                           # broadcast over HW lanes


# ---------------------------------------------------------------------------
# Streaming fallback (only for per-batch slabs too big for VMEM)
# ---------------------------------------------------------------------------
def _pool_sum_kernel(x_ref, o_ref):
    @pl.when(pl.program_id(1) == 0)
    def _():
        o_ref[...] = jnp.zeros_like(o_ref)
    o_ref[...] += jnp.sum(x_ref[...], axis=-1, keepdims=True)


def _scale_kernel(x_ref, s_ref, o_ref):
    o_ref[...] = x_ref[...] * s_ref[...]


def _pick_hw_tile(hw, c, cap_bytes):
    """Largest multiple of 128 dividing hw with c*t*4 <= cap_bytes, else hw."""
    if hw % 128 != 0:
        return hw
    max_t = max(128, (cap_bytes // (4 * c)) // 128 * 128)
    t = min(hw, max_t) // 128 * 128
    while t >= 128:
        if hw % t == 0:
            return t
        t -= 128
    return hw


def _se_forward_streaming(x3, w1, w2, hw_tile, vmem_limit):
    n, c, hw = x3.shape
    grid = (n, hw // hw_tile)
    sums = pl.pallas_call(
        _pool_sum_kernel,
        out_shape=jax.ShapeDtypeStruct((n, c, 1), jnp.float32),
        grid=grid,
        in_specs=[pl.BlockSpec((1, c, hw_tile), lambda b, j: (b, 0, j))],
        out_specs=pl.BlockSpec((1, c, 1), lambda b, j: (b, 0, 0)),
        compiler_params=pltpu.CompilerParams(
            dimension_semantics=("parallel", "arbitrary"),
            vmem_limit_bytes=vmem_limit),
    )(x3)
    # Tiny excitation MLP in plain XLA (a few KFLOPs; a pallas_call would be
    # pure launch overhead here).
    pooled = sums[:, :, 0] * (1.0 / float(hw))                 # (N, C)
    scales = jax.nn.sigmoid(jnp.maximum(pooled @ w1.T, 0.0) @ w2.T)
    out3 = pl.pallas_call(
        _scale_kernel,
        out_shape=jax.ShapeDtypeStruct((n, c, hw), jnp.float32),
        grid=grid,
        in_specs=[pl.BlockSpec((1, c, hw_tile), lambda b, j: (b, 0, j)),
                  pl.BlockSpec((1, c, 1), lambda b, j: (b, 0, 0))],
        out_specs=pl.BlockSpec((1, c, hw_tile), lambda b, j: (b, 0, j)),
        compiler_params=pltpu.CompilerParams(
            dimension_semantics=("parallel", "parallel"),
            vmem_limit_bytes=vmem_limit),
    )(x3, scales[:, :, None])
    return out3


# ---------------------------------------------------------------------------
# Forward pass
# ---------------------------------------------------------------------------
def se_layer_forward(x, w1, w2, *, force_fallback=False):
    """SELayer forward.

    x:  (N, C, H, W) float32
    w1: (C//r, C)    fc1 weight, PyTorch Linear layout (out_features, in_features)
    w2: (C, C//r)    fc2 weight, PyTorch Linear layout
    """
    x = jnp.asarray(x, jnp.float32)
    w1 = jnp.asarray(w1, jnp.float32)
    w2 = jnp.asarray(w2, jnp.float32)

    n, c, h, w = x.shape
    hw = h * w
    cr = w1.shape[0]
    assert w1.shape == (cr, c) and w2.shape == (c, cr), (w1.shape, w2.shape)

    x3 = x.reshape(n, c, hw)
    cap = _vmem_capacity_bytes()
    itemsize = 4
    slab = c * hw * itemsize
    weights = 2 * c * cr * itemsize
    fused_live = 4 * slab + 2 * weights        # double-buffered in + out + weights
    use_fused = (not force_fallback) and fused_live <= int(0.7 * cap)

    if use_fused:
        vmem_limit = int(min(cap - _VMEM_HEADROOM,
                             max(fused_live + (4 << 20), 32 << 20)))
        out3 = pl.pallas_call(
            functools.partial(_se_fused_kernel, inv_hw=1.0 / float(hw)),
            out_shape=jax.ShapeDtypeStruct((n, c, hw), jnp.float32),
            grid=(n,),
            in_specs=[pl.BlockSpec((1, c, hw), lambda b: (b, 0, 0)),
                      pl.BlockSpec((c, cr), lambda b: (0, 0)),   # w1.T (tiny)
                      pl.BlockSpec((c, cr), lambda b: (0, 0))],  # w2 untransposed
            out_specs=pl.BlockSpec((1, c, hw), lambda b: (b, 0, 0)),
            compiler_params=pltpu.CompilerParams(
                dimension_semantics=("parallel",),
                vmem_limit_bytes=vmem_limit),
        )(x3, w1.T, w2)
    else:
        hw_tile = _pick_hw_tile(hw, c, _FALLBACK_TILE_BYTES)
        tile_live = 4 * c * hw_tile * itemsize
        vmem_limit = int(min(cap - _VMEM_HEADROOM,
                             max(tile_live + (4 << 20), 32 << 20)))
        out3 = _se_forward_streaming(x3, w1, w2, hw_tile, vmem_limit)

    return out3.reshape(n, c, h, w)


# ---------------------------------------------------------------------------
# Self-test
# ---------------------------------------------------------------------------
if __name__ == "__main__":
    key = jax.random.PRNGKey(0)
    k_x, k_w1, k_w2 = jax.random.split(key, 3)
    N, C, H, W, R = 2, 32, 16, 16, 8
    x = jax.random.normal(k_x, (N, C, H, W), jnp.float32)
    w1 = 0.1 * jax.random.normal(k_w1, (C // R, C), jnp.float32)   # fc1 (out, in)
    w2 = 0.1 * jax.random.normal(k_w2, (C, C // R), jnp.float32)   # fc2 (out, in)

    # pure-JAX reference (matches the PyTorch module's forward)
    mean = jnp.mean(x, axis=(2, 3))                                # (N, C)
    s = jax.nn.sigmoid(jnp.maximum(mean @ w1.T, 0.0) @ w2.T)       # (N, C)
    ref = x * s[:, :, None, None]

    # fused (primary) path
    fused = jax.jit(se_layer_forward)
    out = fused(x, w1, w2)
    jax.block_until_ready(out)
    assert out.shape == (N, C, H, W), out.shape
    assert bool(jnp.all(jnp.isfinite(out)))
    err = float(jnp.max(jnp.abs(out - ref)))
    assert err < 1e-4, f"fused max err {err}"

    # streaming fallback path (forced, to verify the large-slab code path)
    streaming = jax.jit(functools.partial(se_layer_forward, force_fallback=True))
    out_fb = streaming(x, w1, w2)
    jax.block_until_ready(out_fb)
    err_fb = float(jnp.max(jnp.abs(out_fb - ref)))
    assert err_fb < 1e-4, f"fallback max err {err_fb}"

    print("KERNEL_OK")
</pallas_src>

<mosaic_0001>
module attributes {stable_mosaic.version = 11 : i64} {
  func.func @_se_fused_kernel(%arg0: i32, %arg1: memref<1x32x256xf32, #tpu.memory_space<vmem>>, %arg2: memref<32x4xf32, #tpu.memory_space<vmem>>, %arg3: memref<32x4xf32, #tpu.memory_space<vmem>>, %arg4: memref<1x32x256xf32, #tpu.memory_space<vmem>>) attributes {dimension_semantics = [#tpu.dimension_semantics<parallel>], iteration_bounds = array<i64: 2>, scalar_prefetch = 0 : i64, scratch_operands = 0 : i64, tpu.core_type = #tpu.core_type<tc>, window_params = [{transform_indices = @transform_0, window_bounds = array<i64: 1, 32, 256>}, {pipeline_mode = #tpu.pipeline_mode<synchronous>, transform_indices = @transform_1, window_bounds = array<i64: 32, 4>}, {pipeline_mode = #tpu.pipeline_mode<synchronous>, transform_indices = @transform_2, window_bounds = array<i64: 32, 4>}, {transform_indices = @transform_3, window_bounds = array<i64: 1, 32, 256>}]} {
    %c0 = arith.constant 0 : index
    %c0_0 = arith.constant 0 : index
    %c0_1 = arith.constant 0 : index
    %0 = vector.load %arg1[%c0, %c0_0, %c0_1] : memref<1x32x256xf32, #tpu.memory_space<vmem>>, vector<1x32x256xf32>
    %1 = vector.shape_cast %0 : vector<1x32x256xf32> to vector<32x256xf32>
    %cst = arith.constant dense<0.000000e+00> : vector<32xf32>
    %2 = vector.multi_reduction <add>, %1, %cst [1] : vector<32x256xf32> to vector<32xf32>
    %3 = vector.shape_cast %2 : vector<32xf32> to vector<32x1xf32>
    %cst_2 = arith.constant 3.906250e-03 : f32
    %4 = vector.broadcast %cst_2 : f32 to vector<32x1xf32>
    %5 = arith.mulf %3, %4 : vector<32x1xf32>
    %c0_3 = arith.constant 0 : index
    %c0_4 = arith.constant 0 : index
    %6 = vector.load %arg2[%c0_3, %c0_4] : memref<32x4xf32, #tpu.memory_space<vmem>>, vector<32x4xf32>
    %7 = vector.broadcast %5 : vector<32x1xf32> to vector<32x4xf32>
    %8 = arith.mulf %6, %7 : vector<32x4xf32>
    %cst_5 = arith.constant dense<0.000000e+00> : vector<4xf32>
    %9 = vector.multi_reduction <add>, %8, %cst_5 [0] : vector<32x4xf32> to vector<4xf32>
    %10 = vector.shape_cast %9 : vector<4xf32> to vector<1x4xf32>
    %cst_6 = arith.constant 0.000000e+00 : f32
    %11 = vector.broadcast %cst_6 : f32 to vector<1x4xf32>
    %12 = arith.maximumf %10, %11 : vector<1x4xf32>
    %c0_7 = arith.constant 0 : index
    %c0_8 = arith.constant 0 : index
    %13 = vector.load %arg3[%c0_7, %c0_8] : memref<32x4xf32, #tpu.memory_space<vmem>>, vector<32x4xf32>
    %14 = vector.broadcast %12 : vector<1x4xf32> to vector<32x4xf32>
    %15 = arith.mulf %13, %14 : vector<32x4xf32>
    %cst_9 = arith.constant dense<0.000000e+00> : vector<32xf32>
    %16 = vector.multi_reduction <add>, %15, %cst_9 [1] : vector<32x4xf32> to vector<32xf32>
    %17 = vector.shape_cast %16 : vector<32xf32> to vector<32x1xf32>
    %cst_10 = arith.constant 0.000000e+00 : f32
    %18 = vector.broadcast %cst_10 : f32 to vector<32x1xf32>
    %19 = arith.subf %18, %17 : vector<32x1xf32>
    %20 = math.exp %19 : vector<32x1xf32>
    %cst_11 = arith.constant 1.000000e+00 : f32
    %21 = vector.broadcast %cst_11 : f32 to vector<32x1xf32>
    %22 = arith.addf %21, %20 : vector<32x1xf32>
    %cst_12 = arith.constant 1.000000e+00 : f32
    %23 = vector.broadcast %cst_12 : f32 to vector<32x1xf32>
    %24 = arith.divf %23, %22 : vector<32x1xf32>
    %25 = vector.broadcast %24 : vector<32x1xf32> to vector<32x256xf32>
    %26 = arith.mulf %1, %25 : vector<32x256xf32>
    %c0_13 = arith.constant 0 : index
    %c0_14 = arith.constant 0 : index
    %c0_15 = arith.constant 0 : index
    %27 = vector.load %arg4[%c0_13, %c0_14, %c0_15] : memref<1x32x256xf32, #tpu.memory_space<vmem>>, vector<1x32x256xf32>
    %28 = vector.shape_cast %27 : vector<1x32x256xf32> to vector<32x256xf32>
    %29 = vector.shape_cast %26 : vector<32x256xf32> to vector<1x32x256xf32>
    tpu.vector_store %arg4[%c0_13, %c0_14, %c0_15], %29 {strides = array<i32>} : memref<1x32x256xf32, #tpu.memory_space<vmem>>, vector<1x32x256xf32>,
    return
  }
  func.func @transform_0(%arg0: i32) -> (i32, i32, i32) {
    %c0_i32 = arith.constant 0 : i32
    %c0_i32_0 = arith.constant 0 : i32
    %c0_i32_1 = arith.constant 0 : i32
    return %arg0, %c0_i32, %c0_i32_0 : i32, i32, i32
  }
  func.func @transform_1(%arg0: i32) -> (i32, i32) {
    %c0_i32 = arith.constant 0 : i32
    %c0_i32_0 = arith.constant 0 : i32
    %c0_i32_1 = arith.constant 0 : i32
    return %c0_i32, %c0_i32_0 : i32, i32
  }
  func.func @transform_2(%arg0: i32) -> (i32, i32) {
    %c0_i32 = arith.constant 0 : i32
    %c0_i32_0 = arith.constant 0 : i32
    %c0_i32_1 = arith.constant 0 : i32
    return %c0_i32, %c0_i32_0 : i32, i32
  }
  func.func @transform_3(%arg0: i32) -> (i32, i32, i32) {
    %c0_i32 = arith.constant 0 : i32
    %c0_i32_0 = arith.constant 0 : i32
    %c0_i32_1 = arith.constant 0 : i32
    return %arg0, %c0_i32, %c0_i32_0 : i32, i32, i32
  }
}

</mosaic_0001>

<bundles_post_ra>
// kernel: se_layer_forward.1
= control target key start
LH: loop header
LB: loop body
LE: loop exit
PB: predicated region body
PF: predicated region fallthrough
CT: control target
= control target key end

     0   :  { %s398_s12 = smov 0   ;;  %s486_s0 = inlined_call_operand.vmem [shape: f32[2,32,256], index: 0, kind: input, shape index: {}]   ;;  %s487_s1 = inlined_call_operand.vmem [shape: f32[32,4], index: 1, kind: input, shape index: {}]   ;;  %s488_s2 = inlined_call_operand.vmem [shape: f32[32,4], index: 2, kind: input, shape index: {}]   ;;  %s489_s3 = inlined_call_operand.vmem [shape: f32[2,32,256], index: 3, kind: output, shape index: {}]  }
   0x1 LB: > { %s333_s13 = sadd.s32 4294967295, %s376_s12   ;;  %p337_p0 = scmp.ge.s32.totalorder %s376_s12, 1  ;;  %s376_s12 = sphi %s398_s12, %s13_s12  }
   0x2   : > { %p137_p1 = scmp.lt.s32.totalorder %s376_s12, 3 }
   0x4   : > { %p138_p2 = pnand %p337_p0, %p137_p1 }
   0x5   : > { %p161_p3 = scmp.lt.s32.totalorder (!%p138_p2), %s333_s13, 1 }
   0x6   : > { %141 = sbr.rel (%p138_p2) target bundleno = 367 (0x16f), region = 32 }
   0xb   : > { %s491_s13 = smov (!%p161_p3, %s333_s13), 1  ;;  %v195_v15 = vld [vmem:[%s487_s1] sm:$0xff]  ;;  %v197_v17 = vld [vmem:[%s487_s1 + $0x10] sm:$0xff]  ;;  %v196_v18 = vld [vmem:[%s487_s1 + $0x8] sm:$0xff]  ;;  %vm203_vm0 = vcmask 31744  }
   0xc   : > { %s344_s14 = sshll.u32 %s491_s13, 6  ;;  %v198_v22 = vld [vmem:[%s487_s1 + $0x18] sm:$0xff]  ;;  %v219_v41 = vld [vmem:[%s488_s2 + $0x8] sm:$0xff]  ;;  %v218_v42 = vld [vmem:[%s488_s2] sm:$0xff] }
   0xd   : > { %s165_s17 = scalar_lea.vmem %s486_s0, %s344_s14  ;;  %v221_v44 = vld [vmem:[%s488_s2 + $0x18] sm:$0xff]  ;;  %v220_v45 = vld [vmem:[%s488_s2 + $0x10] sm:$0xff]  ;;  %s170_s9 = scalar_lea.vmem %s489_s3, %s344_s14 }
   0xe   : > { %v414_v0 = vld [vmem:[%s165_s17] sm:$0xff]  ;;  %v416_v1 = vld [vmem:[%s165_s17 + $0x8] sm:$0xff]  ;;  %v424_v5 = vld [vmem:[%s165_s17 + $0x10] sm:$0xff] }
   0xf   : > { %v418_v2 = vld [vmem:[%s165_s17 + $0x20] sm:$0xff]  ;;  %v179_v3 = vadd.f32 %v416_v1, %v414_v0  ;;  %v422_v4 = vld [vmem:[%s165_s17 + $0x28] sm:$0xff]  ;;  %v426_v6 = vld [vmem:[%s165_s17 + $0x18] sm:$0xff] }
  0x10   : > { %v185_v7 = vadd.f32 %v422_v4, %v418_v2  ;;  %v430_v8 = vld [vmem:[%s165_s17 + $0x30] sm:$0xff]  ;;  %v432_v9 = vld [vmem:[%s165_s17 + $0x38] sm:$0xff]  ;;  %v182_v10 = vadd.f32 %v426_v6, %v424_v5 }
  0x11   : > { %180 = vadd.xlane.f32.xlu0 %v179_v3  ;;  %v188_v11 = vadd.f32 %v432_v9, %v430_v8 }
  0x12   : > { %186 = vadd.xlane.f32.xlu1 %v185_v7 }
  0x15   : > { %183 = vadd.xlane.f32.xlu0 %v182_v10 }
  0x16   : > { %189 = vadd.xlane.f32.xlu1 %v188_v11 }
  0x9a   : > { %v181_v12 = vpop.xlane.xlu0 %180 }
  0x9b   : > { %v191_v13 = vmul.f32 0.00390625, %v181_v12  ;;  %v187_v14 = vpop.xlane.xlu1 %186 }
  0x9c   : > { %v193_v16 = vmul.f32 0.00390625, %v187_v14 }
  0x9d   : > { %v199_v20 = vmul.f32 %v195_v15, %v191_v13 }
  0x9e   : > { %v184_v19 = vpop.xlane.xlu0 %183  ;;  %v201_v25 = vmul.f32 %v197_v17, %v193_v16 }
  0x9f   : > { %v192_v21 = vmul.f32 0.00390625, %v184_v19  ;;  %v190_v23 = vpop.xlane.xlu1 %189  ;;  %v204_v28 = vsel %vm203_vm0, %v199_v20, 0.0 }
  0xa0   : > { %v194_v24 = vmul.f32 0.00390625, %v190_v23  ;;  %v207_v31 = vsel %vm203_vm0, %v201_v25, 0.0 }
  0xa1   : > { %v200_v26 = vmul.f32 %v196_v18, %v192_v21 }
  0xa2   : > { %v202_v27 = vmul.f32 %v198_v22, %v194_v24 }
  0xa3   : > { %v205_v29 = vsel %vm203_vm0, %v200_v26, 0.0 }
  0xa4   : > { %v206_v30 = vadd.f32 %v205_v29, %v204_v28  ;;  %v209_v32 = vsel %vm203_vm0, %v202_v27, 0.0 }
  0xa6   : > { %v208_v33 = vadd.f32 %v207_v31, %v206_v30 }
  0xa8   : > { %v210_v34 = vadd.f32 %v209_v32, %v208_v33 }
  0xaa   : > { %v211_v35 = vrot.slane %v210_v34, 4 }
  0xac   : > { %v212_v36 = vadd.f32 %v211_v35, %v210_v34 }
  0xae   : > { %v213_v37 = vrot.slane %v212_v36, 2 }
  0xb0   : > { %v214_v38 = vadd.f32 %v213_v37, %v212_v36 }
  0xb2   : > { %v215_v39 = vrot.slane %v214_v38, 1 }
  0xb4   : > { %v216_v40 = vadd.f32 %v215_v39, %v214_v38 }
  0xb6   : > { %v217_v43 = vmax.f32 %v216_v40, 0.0 }
  0xb8   : > { %v223_v46 = vmul.f32 %v219_v41, %v217_v43  ;;  %v222_v47 = vmul.f32 %v218_v42, %v217_v43  ;;  %v225_v50 = vmul.f32 %v221_v44, %v217_v43  ;;  %v224_v51 = vmul.f32 %v220_v45, %v217_v43 }
  0xba   : > { %v229_v48 = vsel %vm203_vm0, %v223_v46, 0.0  ;;  %v226_v49 = vsel %vm203_vm0, %v222_v47, 0.0  ;;  %v235_v52 = vsel %vm203_vm0, %v225_v50, 0.0  ;;  %v232_v53 = vsel %vm203_vm0, %v224_v51, 0.0 }
  0xbb   : > { %230 = vadd.xlane.f32.xlu1 %v229_v48  ;;  %227 = vadd.xlane.f32.xlu0 %v226_v49 }
  0xbf   : > { %236 = vadd.xlane.f32.xlu1 %v235_v52  ;;  %233 = vadd.xlane.f32.xlu0 %v232_v53 }
 0x144   : > { %v231_v54 = vpop.xlane.xlu1 %230  ;;  %v228_v55 = vpop.xlane.xlu0 %227 }
 0x145   : > { %v239_v56 = vsub.f32 0.0, %v231_v54  ;;  %v238_v57 = vsub.f32 0.0, %v228_v55 }
 0x147   : > { %v244_v58 = vmul.f32 1.442695, %v239_v56  ;;  %v242_v59 = vmul.f32 1.442695, %v238_v57 }
 0x148   : > { %v237_v60 = vpop.xlane.xlu1 %236  ;;  %v234_v61 = vpop.xlane.xlu0 %233 }
 0x149   : > { %354 = vpow2.f32 %v244_v58  ;;  %v241_v62 = vsub.f32 0.0, %v237_v60  ;;  %v240_v63 = vsub.f32 0.0, %v234_v61 }
 0x14a   : > { %356 = vpow2.f32 %v242_v59 }
 0x14b   : > { %v248_v3 = vmul.f32 1.442695, %v241_v62  ;;  %v246_v7 = vmul.f32 1.442695, %v240_v63 }
 0x14d   : > { %358 = vpow2.f32 %v248_v3 }
 0x14e   : > { %360 = vpow2.f32 %v246_v7 }
 0x156   : > { %v355_v10 = vpop.eup %354 }
 0x157   : > { %v357_v11 = vpop.eup %356  ;;  %v251_v12 = vadd.f32 1.0, %v355_v10 }
 0x158   : > { %v250_v13 = vadd.f32 1.0, %v357_v11 }
 0x159   : > { %362 = vrcp.f32 %v251_v12 }
 0x15a   : > { %v359_v14 = vpop.eup %358  ;;  %364 = vrcp.f32 %v250_v13 }
 0x15b   : > { %v361_v15 = vpop.eup %360  ;;  %v253_v16 = vadd.f32 1.0, %v359_v14 }
 0x15c   : > { %v252_v17 = vadd.f32 1.0, %v361_v15 }
 0x15d   : > { %366 = vrcp.f32 %v253_v16 }
 0x15e   : > { %368 = vrcp.f32 %v252_v17 }
 0x166   : > { %v363_v18 = vpop.eup %362 }
 0x167   : > { %v365_v19 = vpop.eup %364  ;;  %v264_v20 = vmul.f32 %v363_v18, %v424_v5  ;;  %v265_v21 = vmul.f32 %v363_v18, %v426_v6 }
 0x168   : > { %v262_v22 = vmul.f32 %v365_v19, %v414_v0  ;;  %v263_v23 = vmul.f32 %v365_v19, %v416_v1 }
 0x169   : > { %272 = vst [vmem:[%s170_s9 + $0x10] sm:$0xff] %v264_v20  ;;  %273 = vst [vmem:[%s170_s9 + $0x18] sm:$0xff] %v265_v21 }
 0x16a   : > { %v367_v24 = vpop.eup %366  ;;  %270 = vst [vmem:[%s170_s9] sm:$0xff] %v262_v22  ;;  %271 = vst [vmem:[%s170_s9 + $0x8] sm:$0xff] %v263_v23 }
 0x16b   : > { %v369_v25 = vpop.eup %368  ;;  %v268_v26 = vmul.f32 %v367_v24, %v430_v8  ;;  %v269_v27 = vmul.f32 %v367_v24, %v432_v9 }
 0x16c   : > { %v266_v28 = vmul.f32 %v369_v25, %v418_v2  ;;  %v267_v5 = vmul.f32 %v369_v25, %v422_v4 }
 0x16d   : > { %276 = vst [vmem:[%s170_s9 + $0x30] sm:$0xff] %v268_v26  ;;  %277 = vst [vmem:[%s170_s9 + $0x38] sm:$0xff] %v269_v27 }
 0x16e   : > { %274 = vst [vmem:[%s170_s9 + $0x20] sm:$0xff] %v266_v28  ;;  %275 = vst [vmem:[%s170_s9 + $0x28] sm:$0xff] %v267_v5 }
 0x16f PF: > { %s13_s12 = sadd.s32 1, %s376_s12  }
 0x170   : > { %p10_p4 = scmp.ge.s32.totalorder %s13_s12, 4  }
 0x172   :  { %12 = sbr.rel (!%p10_p4) target bundleno = 1 (0x1), region = 62 }

</bundles_post_ra>
